<compile_context>
chip_gen: v7x
topology: tpu7x:2x2x1
jax: 0.10.0
libtpu: 0.0.40
codegen_flags: <defaults>
</compile_context>

<pallas_src>
import itertools
import numpy as np
import jax
import jax.numpy as jnp
from jax.experimental import pallas as pl
from jax.experimental.pallas import tpu as pltpu

SIGMA = 0.2   # gaussian smearing width of distf
WS = 0.5      # exponential decay of weightf


def _make_mbtr_kernel(n_coord, norm_c):
    inv_2s2 = 1.0 / (2.0 * SIGMA * SIGMA)
    inv_s2 = 1.0 / (SIGMA * SIGMA)

    def kernel(ri_ref, rj_ref, sm_ref, sd_ref, grid_ref,   # VMEM inputs (streamed)
               mbtr_ref, div_ref):                          # VMEM outputs (accumulators)
        # Fresh group -> zero the resident output blocks once, then accumulate over tiles.
        @pl.when(pl.program_id(1) == 0)
        def _init():
            mbtr_ref[...] = jnp.zeros_like(mbtr_ref)
            div_ref[...] = jnp.zeros_like(div_ref)

        ri = ri_ref[0, 0]                 # (P, C)  pre-gathered r_i, rows ordered (pair, batch)
        rj = rj_ref[0, 0]                 # (P, C)
        grid_row = grid_ref[...]          # (1, G)

        diff = ri - rj                                         # (P, C)
        d2 = jnp.sum(diff * diff, axis=-1, keepdims=True)      # (P, 1)
        inv_d = jax.lax.rsqrt(d2)                              # EUP rsqrt, no divide
        inv_d2 = inv_d * inv_d
        d = d2 * inv_d
        wf = jnp.exp(-WS * d)                                  # weightf   (P, 1)
        gf = inv_d                                             # geomf     (P, 1)

        x = grid_row - gf                                      # (P, G)  full-vreg work
        gridv = norm_c * jnp.exp(-(x * x) * inv_2s2)           # distf     (P, G)

        # ---- mbtr: per-batch segment-sum over the pair tile on the MXU ----
        wg = wf * gridv                                        # (P, G)
        mbtr_ref[0] = mbtr_ref[0] + jnp.dot(
            sm_ref[0, 0], wg,                                  # (B, P) @ (P, G) -> (B, G)
            preferred_element_type=jnp.float32,
            precision=jax.lax.Precision.HIGHEST)

        # ---- factored analytic derivative (compute_div=True path) ----
        #   ci[p, c, g] = (-wf*diff_c*inv_d) * (WS*gridv + grid_div*inv_d^2)
        a_fac = -(wf * inv_d) * diff                           # (P, C)
        b_fac = gridv * (WS + x * inv_s2 * inv_d2)             # (P, G)
        # Build ci already lane-merged as (P, C*G): no C=3-padded (C, G) intermediate.
        ci_flat = jnp.concatenate(
            [a_fac[:, c:c + 1] * b_fac for c in range(n_coord)], axis=1)

        # ---- div: signed one-hot atom scatter as a single MXU matmul per tile ----
        div_ref[0] = div_ref[0] + jnp.dot(
            sd_ref[0, 0], ci_flat,                             # (N*B, P) @ (P, C*G)
            preferred_element_type=jnp.float32,
            precision=jax.lax.Precision.HIGHEST)

    return kernel


def mbtr_forward(r, z, grid, *, tj=8):
    """r: (B, N_ATOM, C) f32, z: static python list of ints, grid: (G,) f32."""
    r = jnp.asarray(r, jnp.float32)
    grid = jnp.asarray(grid, jnp.float32)
    B, N, C = r.shape
    G = grid.shape[0]
    z = [int(v) for v in z]
    elements = sorted(set(z))
    E = len(elements)
    dx = float(grid[1] - grid[0])
    norm_c = dx / (SIGMA * np.sqrt(2.0 * np.pi))

    # Group ordered distinct atom pairs by element pair (zi, zj).
    groups = [[] for _ in range(E * E)]
    for i, j in itertools.product(range(N), repeat=2):
        if i == j:
            continue
        gidx = elements.index(z[i]) * E + elements.index(z[j])
        groups[gidx].append((i, j))
    n_groups = E * E
    maxg = max(max((len(gr) for gr in groups), default=0), 1)
    maxg_pad = -(-maxg // tj) * tj           # pad pair count to a multiple of TJ
    n_ptiles = maxg_pad // tj
    P = tj * B                               # rows per tile, ordered (pair, batch)

    # Host-precomputed, static (depends only on z / shapes): scatter matrices with the
    # batch one-hot and the pair-validity mask baked in (zero columns for padded pairs).
    ai_idx = np.zeros((n_groups, maxg_pad), np.int32)
    aj_idx = np.zeros((n_groups, maxg_pad), np.int32)
    pad_off = np.ones((n_groups, maxg_pad), np.float32)          # 1.0 on padded slots
    SM = np.zeros((n_groups, maxg_pad, B, B), np.float32)        # rows (t,b) x cols b'
    SD = np.zeros((n_groups, maxg_pad, B, N * B), np.float32)    # rows (t,b) x cols (n,b')
    for g, prs in enumerate(groups):
        for t, (i, j) in enumerate(prs):
            ai_idx[g, t] = i
            aj_idx[g, t] = j
            pad_off[g, t] = 0.0
            for b in range(B):
                SM[g, t, b, b] = 1.0
                SD[g, t, b, i * B + b] = 1.0
                SD[g, t, b, j * B + b] = -1.0
    # Explicit tile axis + transpose so the kernel does a canonical (cols, P) @ (P, F) dot.
    SM_T = np.ascontiguousarray(
        np.transpose(SM.reshape(n_groups, n_ptiles, P, B), (0, 1, 3, 2)))
    SD_T = np.ascontiguousarray(
        np.transpose(SD.reshape(n_groups, n_ptiles, P, N * B), (0, 1, 3, 2)))

    # Pre-gathered per-pair coordinates (tiny vs. div; streamed/pipelined by BlockSpec).
    r_nbc = jnp.transpose(r, (1, 0, 2))                          # (N, B, C)
    RI = jnp.take(r_nbc, jnp.asarray(ai_idx), axis=0)            # (ng, maxg_pad, B, C)
    RJ = jnp.take(r_nbc, jnp.asarray(aj_idx), axis=0)
    RJ = RJ + jnp.asarray(pad_off)[:, :, None, None]             # padded pairs: rj = ri + 1 (finite d)
    RI = RI.reshape(n_groups, n_ptiles, P, C)
    RJ = RJ.reshape(n_groups, n_ptiles, P, C)
    grid2d = grid.reshape(1, G)

    kernel = _make_mbtr_kernel(C, norm_c)

    out_shapes = (
        jax.ShapeDtypeStruct((n_groups, B, G), jnp.float32),
        jax.ShapeDtypeStruct((n_groups, N * B, C * G), jnp.float32),   # lane-dense div
    )
    grid_spec = pltpu.PrefetchScalarGridSpec(
        num_scalar_prefetch=0,
        grid=(n_groups, n_ptiles),
        in_specs=[
            pl.BlockSpec((1, 1, P, C), lambda g, t: (g, t, 0, 0)),       # RI
            pl.BlockSpec((1, 1, P, C), lambda g, t: (g, t, 0, 0)),       # RJ
            pl.BlockSpec((1, 1, B, P), lambda g, t: (g, t, 0, 0)),       # SM_T
            pl.BlockSpec((1, 1, N * B, P), lambda g, t: (g, t, 0, 0)),   # SD_T
            pl.BlockSpec((1, G), lambda g, t: (0, 0)),                   # grid
        ],
        out_specs=[
            pl.BlockSpec((1, B, G), lambda g, t: (g, 0, 0)),             # mbtr accumulator
            pl.BlockSpec((1, N * B, C * G), lambda g, t: (g, 0, 0)),     # div accumulator
        ],
    )
    mbtr_k, div_k = pl.pallas_call(
        kernel,
        out_shape=out_shapes,
        grid_spec=grid_spec,
        compiler_params=pltpu.CompilerParams(
            dimension_semantics=("parallel", "arbitrary")),
    )(RI, RJ, jnp.asarray(SM_T), jnp.asarray(SD_T), grid2d)

    # Reorder to the PyTorch module's output layout (required by the module contract).
    mbtr = jnp.transpose(mbtr_k.reshape(E, E, B, G), (2, 0, 1, 3))
    mbtr_div = jnp.transpose(div_k.reshape(E, E, N, B, C, G), (3, 0, 1, 5, 2, 4))
    return mbtr, mbtr_div


def mbtr_reference(r, z, grid):
    """Pure-numpy mirror of the PyTorch forward (order=2, compute_div=True)."""
    r = np.asarray(r, np.float64)
    grid = np.asarray(grid, np.float64)
    b, n_atom, coord = r.shape
    elements = sorted(set(z))
    E = len(elements)
    G = grid.shape[0]
    dx = grid[1] - grid[0]
    order = 2
    mbtr = np.zeros((b,) + (E,) * order + (G,))
    mbtr_div = np.zeros((b,) + (E,) * order + (G, n_atom, coord))
    norm_c = dx / (SIGMA * np.sqrt(2.0 * np.pi))
    for atom_ids in itertools.product(range(n_atom), repeat=order):
        if len(set(atom_ids)) != len(atom_ids):
            continue
        zs = [elements.index(z[a]) for a in atom_ids]
        i, j = atom_ids
        diff = r[:, i] - r[:, j]
        d = np.sqrt(np.sum(diff * diff, -1, keepdims=True))          # (b,1)
        gf = 1.0 / d                                                  # geomf
        wf = np.exp(-WS * d)                                          # weightf (b,1)
        x = grid[None, :] - gf                                        # (b,G)
        gridv = norm_c * np.exp(-x * x / (2.0 * SIGMA * SIGMA))       # distf
        mbtr[:, zs[0], zs[1], :] += wf * gridv
        grid_div = gridv * x / (SIGMA * SIGMA)                        # distf.div
        gf_div = np.stack([-diff / d ** 3, diff / d ** 3], axis=1)    # geomf.div  (b,2,3)
        wf_div = np.stack([-WS * wf * diff / d, WS * wf * diff / d], 1)  # weightf.div
        div = (gridv[:, :, None] * wf_div.reshape(b, 1, -1)
               + grid_div[:, :, None] * gf_div.reshape(b, 1, -1) * wf[:, :, None]
               ).reshape(b, G, order, coord)
        for o, a in enumerate(atom_ids):
            mbtr_div[:, zs[0], zs[1], :, a, :] += div[:, :, o, :]
    return mbtr.astype(np.float32), mbtr_div.astype(np.float32)


if __name__ == "__main__":
    key = jax.random.PRNGKey(0)
    B, N_ATOM, C, G = 2, 4, 3, 128
    r = jax.random.uniform(key, (B, N_ATOM, C), jnp.float32, minval=0.5, maxval=3.0)
    z = [1, 1, 8, 8]                         # two element species -> E=2
    grid = jnp.linspace(0.05, 2.0, G, dtype=jnp.float32)   # deterministic "parameter"

    mbtr, mbtr_div = mbtr_forward(r, z, grid)
    jax.block_until_ready((mbtr, mbtr_div))

    ref_mbtr, ref_div = mbtr_reference(np.asarray(r), z, np.asarray(grid))
    np.testing.assert_allclose(np.asarray(mbtr), ref_mbtr, rtol=5e-4, atol=1e-5)
    np.testing.assert_allclose(np.asarray(mbtr_div), ref_div, rtol=5e-4, atol=1e-5)
    print("KERNEL_OK")
</pallas_src>

<mosaic_0001>
module attributes {stable_mosaic.version = 11 : i64} {
  func.func @kernel(%arg0: i32, %arg1: i32, %arg2: memref<1x1x16x3xf32, #tpu.memory_space<vmem>>, %arg3: memref<1x1x16x3xf32, #tpu.memory_space<vmem>>, %arg4: memref<1x1x2x16xf32, #tpu.memory_space<vmem>>, %arg5: memref<1x1x8x16xf32, #tpu.memory_space<vmem>>, %arg6: memref<1x128xf32, #tpu.memory_space<vmem>>, %arg7: memref<1x2x128xf32, #tpu.memory_space<vmem>>, %arg8: memref<1x8x384xf32, #tpu.memory_space<vmem>>) attributes {dimension_semantics = [#tpu.dimension_semantics<parallel>, #tpu.dimension_semantics<arbitrary>], iteration_bounds = array<i64: 4, 1>, scalar_prefetch = 0 : i64, scratch_operands = 0 : i64, tpu.core_type = #tpu.core_type<tc>, window_params = [{transform_indices = @transform_0, window_bounds = array<i64: 1, 1, 16, 3>}, {transform_indices = @transform_1, window_bounds = array<i64: 1, 1, 16, 3>}, {transform_indices = @transform_2, window_bounds = array<i64: 1, 1, 2, 16>}, {transform_indices = @transform_3, window_bounds = array<i64: 1, 1, 8, 16>}, {pipeline_mode = #tpu.pipeline_mode<synchronous>, transform_indices = @transform_4, window_bounds = array<i64: 1, 128>}, {transform_indices = @transform_5, window_bounds = array<i64: 1, 2, 128>}, {transform_indices = @transform_6, window_bounds = array<i64: 1, 8, 384>}]} {
    %c0_i32 = arith.constant 0 : i32
    %0 = arith.cmpi eq, %arg1, %c0_i32 : i32
    %1 = arith.extui %0 : i1 to i32
    %c0_i32_0 = arith.constant 0 : i32
    %2 = arith.cmpi ne, %1, %c0_i32_0 : i32
    scf.if %2 {
      %cst_39 = arith.constant 0.000000e+00 : f32
      %71 = vector.broadcast %cst_39 : f32 to vector<1x2x128xf32>
      %c0_40 = arith.constant 0 : index
      %c0_41 = arith.constant 0 : index
      %c0_42 = arith.constant 0 : index
      %72 = vector.load %arg7[%c0_40, %c0_41, %c0_42] : memref<1x2x128xf32, #tpu.memory_space<vmem>>, vector<1x2x128xf32>
      tpu.vector_store %arg7[%c0_40, %c0_41, %c0_42], %71 {strides = array<i32>} : memref<1x2x128xf32, #tpu.memory_space<vmem>>, vector<1x2x128xf32>,
      %cst_43 = arith.constant 0.000000e+00 : f32
      %73 = vector.broadcast %cst_43 : f32 to vector<1x8x384xf32>
      %c0_44 = arith.constant 0 : index
      %c0_45 = arith.constant 0 : index
      %c0_46 = arith.constant 0 : index
      %74 = vector.load %arg8[%c0_44, %c0_45, %c0_46] : memref<1x8x384xf32, #tpu.memory_space<vmem>>, vector<1x8x384xf32>
      tpu.vector_store %arg8[%c0_44, %c0_45, %c0_46], %73 {strides = array<i32>} : memref<1x8x384xf32, #tpu.memory_space<vmem>>, vector<1x8x384xf32>,
    } else {
    }
    %c0 = arith.constant 0 : index
    %c0_1 = arith.constant 0 : index
    %c0_2 = arith.constant 0 : index
    %c0_3 = arith.constant 0 : index
    %3 = vector.load %arg2[%c0, %c0_1, %c0_2, %c0_3] : memref<1x1x16x3xf32, #tpu.memory_space<vmem>>, vector<1x1x16x3xf32>
    %4 = vector.shape_cast %3 : vector<1x1x16x3xf32> to vector<16x3xf32>
    %c0_4 = arith.constant 0 : index
    %c0_5 = arith.constant 0 : index
    %c0_6 = arith.constant 0 : index
    %c0_7 = arith.constant 0 : index
    %5 = vector.load %arg3[%c0_4, %c0_5, %c0_6, %c0_7] : memref<1x1x16x3xf32, #tpu.memory_space<vmem>>, vector<1x1x16x3xf32>
    %6 = vector.shape_cast %5 : vector<1x1x16x3xf32> to vector<16x3xf32>
    %c0_8 = arith.constant 0 : index
    %c0_9 = arith.constant 0 : index
    %7 = vector.load %arg6[%c0_8, %c0_9] : memref<1x128xf32, #tpu.memory_space<vmem>>, vector<1x128xf32>
    %8 = arith.subf %4, %6 : vector<16x3xf32>
    %9 = arith.mulf %8, %8 : vector<16x3xf32>
    %cst = arith.constant dense<0.000000e+00> : vector<16xf32>
    %10 = vector.multi_reduction <add>, %9, %cst [1] : vector<16x3xf32> to vector<16xf32>
    %11 = vector.shape_cast %10 : vector<16xf32> to vector<16x1xf32>
    %12 = math.rsqrt %11 : vector<16x1xf32>
    %13 = arith.mulf %12, %12 : vector<16x1xf32>
    %14 = arith.mulf %11, %12 : vector<16x1xf32>
    %cst_10 = arith.constant -5.000000e-01 : f32
    %15 = vector.broadcast %cst_10 : f32 to vector<16x1xf32>
    %16 = arith.mulf %15, %14 : vector<16x1xf32>
    %17 = math.exp %16 : vector<16x1xf32>
    %18 = vector.broadcast %7 : vector<1x128xf32> to vector<16x128xf32>
    %19 = vector.broadcast %12 : vector<16x1xf32> to vector<16x128xf32>
    %20 = arith.subf %18, %19 : vector<16x128xf32>
    %21 = arith.mulf %20, %20 : vector<16x128xf32>
    %cst_11 = arith.constant 0.000000e+00 : f32
    %22 = vector.broadcast %cst_11 : f32 to vector<16x128xf32>
    %23 = arith.subf %22, %21 : vector<16x128xf32>
    %cst_12 = arith.constant 1.250000e+01 : f32
    %24 = vector.broadcast %cst_12 : f32 to vector<16x128xf32>
    %25 = arith.mulf %23, %24 : vector<16x128xf32>
    %26 = math.exp %25 : vector<16x128xf32>
    %cst_13 = arith.constant 0.0306274612 : f32
    %27 = vector.broadcast %cst_13 : f32 to vector<16x128xf32>
    %28 = arith.mulf %27, %26 : vector<16x128xf32>
    %29 = vector.broadcast %17 : vector<16x1xf32> to vector<16x128xf32>
    %30 = arith.mulf %29, %28 : vector<16x128xf32>
    %c0_14 = arith.constant 0 : index
    %c0_15 = arith.constant 0 : index
    %c0_16 = arith.constant 0 : index
    %31 = vector.load %arg7[%c0_14, %c0_15, %c0_16] : memref<1x2x128xf32, #tpu.memory_space<vmem>>, vector<1x2x128xf32>
    %32 = vector.shape_cast %31 : vector<1x2x128xf32> to vector<2x128xf32>
    %c0_17 = arith.constant 0 : index
    %c0_18 = arith.constant 0 : index
    %c0_19 = arith.constant 0 : index
    %c0_20 = arith.constant 0 : index
    %33 = vector.load %arg4[%c0_17, %c0_18, %c0_19, %c0_20] : memref<1x1x2x16xf32, #tpu.memory_space<vmem>>, vector<1x1x2x16xf32>
    %34 = vector.shape_cast %33 : vector<1x1x2x16xf32> to vector<2x16xf32>
    %cst_21 = arith.constant dense<0.000000e+00> : vector<2x128xf32>
    %35 = tpu.matmul %34, %30, %cst_21 {dimension_numbers = #tpu.dot_dimension_numbers<[1], [0], [0], [1], [0, 0, 1, 1], [], []>, precision = #tpu.contract_precision<fp32>} : vector<2x16xf32>, vector<16x128xf32>, vector<2x128xf32> -> vector<2x128xf32>
    %36 = arith.addf %32, %35 : vector<2x128xf32>
    %c0_22 = arith.constant 0 : index
    %c0_23 = arith.constant 0 : index
    %c0_24 = arith.constant 0 : index
    %37 = vector.load %arg7[%c0_22, %c0_23, %c0_24] : memref<1x2x128xf32, #tpu.memory_space<vmem>>, vector<1x2x128xf32>
    %38 = vector.shape_cast %37 : vector<1x2x128xf32> to vector<2x128xf32>
    %39 = vector.shape_cast %36 : vector<2x128xf32> to vector<1x2x128xf32>
    tpu.vector_store %arg7[%c0_22, %c0_23, %c0_24], %39 {strides = array<i32>} : memref<1x2x128xf32, #tpu.memory_space<vmem>>, vector<1x2x128xf32>,
    %40 = arith.mulf %17, %12 : vector<16x1xf32>
    %cst_25 = arith.constant 0.000000e+00 : f32
    %41 = vector.broadcast %cst_25 : f32 to vector<16x1xf32>
    %42 = arith.subf %41, %40 : vector<16x1xf32>
    %43 = vector.broadcast %42 : vector<16x1xf32> to vector<16x3xf32>
    %44 = arith.mulf %43, %8 : vector<16x3xf32>
    %cst_26 = arith.constant 2.500000e+01 : f32
    %45 = vector.broadcast %cst_26 : f32 to vector<16x128xf32>
    %46 = arith.mulf %20, %45 : vector<16x128xf32>
    %47 = vector.broadcast %13 : vector<16x1xf32> to vector<16x128xf32>
    %48 = arith.mulf %46, %47 : vector<16x128xf32>
    %cst_27 = arith.constant 5.000000e-01 : f32
    %49 = vector.broadcast %cst_27 : f32 to vector<16x128xf32>
    %50 = arith.addf %49, %48 : vector<16x128xf32>
    %51 = arith.mulf %28, %50 : vector<16x128xf32>
    %52 = vector.extract_strided_slice %44 {offsets = [0, 0], sizes = [16, 1], strides = [1, 1]} : vector<16x3xf32> to vector<16x1xf32>
    %53 = vector.broadcast %52 : vector<16x1xf32> to vector<16x128xf32>
    %54 = arith.mulf %53, %51 : vector<16x128xf32>
    %55 = vector.extract_strided_slice %44 {offsets = [0, 1], sizes = [16, 1], strides = [1, 1]} : vector<16x3xf32> to vector<16x1xf32>
    %56 = vector.broadcast %55 : vector<16x1xf32> to vector<16x128xf32>
    %57 = arith.mulf %56, %51 : vector<16x128xf32>
    %58 = vector.extract_strided_slice %44 {offsets = [0, 2], sizes = [16, 1], strides = [1, 1]} : vector<16x3xf32> to vector<16x1xf32>
    %59 = vector.broadcast %58 : vector<16x1xf32> to vector<16x128xf32>
    %60 = arith.mulf %59, %51 : vector<16x128xf32>
    %61 = tpu.concatenate %54, %57, %60 in 1 : vector<16x128xf32>, vector<16x128xf32>, vector<16x128xf32> -> vector<16x384xf32>
    %c0_28 = arith.constant 0 : index
    %c0_29 = arith.constant 0 : index
    %c0_30 = arith.constant 0 : index
    %62 = vector.load %arg8[%c0_28, %c0_29, %c0_30] : memref<1x8x384xf32, #tpu.memory_space<vmem>>, vector<1x8x384xf32>
    %63 = vector.shape_cast %62 : vector<1x8x384xf32> to vector<8x384xf32>
    %c0_31 = arith.constant 0 : index
    %c0_32 = arith.constant 0 : index
    %c0_33 = arith.constant 0 : index
    %c0_34 = arith.constant 0 : index
    %64 = vector.load %arg5[%c0_31, %c0_32, %c0_33, %c0_34] : memref<1x1x8x16xf32, #tpu.memory_space<vmem>>, vector<1x1x8x16xf32>
    %65 = vector.shape_cast %64 : vector<1x1x8x16xf32> to vector<8x16xf32>
    %cst_35 = arith.constant dense<0.000000e+00> : vector<8x384xf32>
    %66 = tpu.matmul %65, %61, %cst_35 {dimension_numbers = #tpu.dot_dimension_numbers<[1], [0], [0], [1], [0, 0, 1, 1], [], []>, precision = #tpu.contract_precision<fp32>} : vector<8x16xf32>, vector<16x384xf32>, vector<8x384xf32> -> vector<8x384xf32>
    %67 = arith.addf %63, %66 : vector<8x384xf32>
    %c0_36 = arith.constant 0 : index
    %c0_37 = arith.constant 0 : index
    %c0_38 = arith.constant 0 : index
    %68 = vector.load %arg8[%c0_36, %c0_37, %c0_38] : memref<1x8x384xf32, #tpu.memory_space<vmem>>, vector<1x8x384xf32>
    %69 = vector.shape_cast %68 : vector<1x8x384xf32> to vector<8x384xf32>
    %70 = vector.shape_cast %67 : vector<8x384xf32> to vector<1x8x384xf32>
    tpu.vector_store %arg8[%c0_36, %c0_37, %c0_38], %70 {strides = array<i32>} : memref<1x8x384xf32, #tpu.memory_space<vmem>>, vector<1x8x384xf32>,
    return
  }
  func.func @transform_0(%arg0: i32, %arg1: i32) -> (i32, i32, i32, i32) {
    %c0_i32 = arith.constant 0 : i32
    %c0_i32_0 = arith.constant 0 : i32
    %c0_i32_1 = arith.constant 0 : i32
    return %arg0, %arg1, %c0_i32, %c0_i32_0 : i32, i32, i32, i32
  }
  func.func @transform_1(%arg0: i32, %arg1: i32) -> (i32, i32, i32, i32) {
    %c0_i32 = arith.constant 0 : i32
    %c0_i32_0 = arith.constant 0 : i32
    %c0_i32_1 = arith.constant 0 : i32
    return %arg0, %arg1, %c0_i32, %c0_i32_0 : i32, i32, i32, i32
  }
  func.func @transform_2(%arg0: i32, %arg1: i32) -> (i32, i32, i32, i32) {
    %c0_i32 = arith.constant 0 : i32
    %c0_i32_0 = arith.constant 0 : i32
    %c0_i32_1 = arith.constant 0 : i32
    return %arg0, %arg1, %c0_i32, %c0_i32_0 : i32, i32, i32, i32
  }
  func.func @transform_3(%arg0: i32, %arg1: i32) -> (i32, i32, i32, i32) {
    %c0_i32 = arith.constant 0 : i32
    %c0_i32_0 = arith.constant 0 : i32
    %c0_i32_1 = arith.constant 0 : i32
    return %arg0, %arg1, %c0_i32, %c0_i32_0 : i32, i32, i32, i32
  }
  func.func @transform_4(%arg0: i32, %arg1: i32) -> (i32, i32) {
    %c0_i32 = arith.constant 0 : i32
    %c0_i32_0 = arith.constant 0 : i32
    %c0_i32_1 = arith.constant 0 : i32
    return %c0_i32, %c0_i32_0 : i32, i32
  }
  func.func @transform_5(%arg0: i32, %arg1: i32) -> (i32, i32, i32) {
    %c0_i32 = arith.constant 0 : i32
    %c0_i32_0 = arith.constant 0 : i32
    %c0_i32_1 = arith.constant 0 : i32
    return %arg0, %c0_i32, %c0_i32_0 : i32, i32, i32
  }
  func.func @transform_6(%arg0: i32, %arg1: i32) -> (i32, i32, i32) {
    %c0_i32 = arith.constant 0 : i32
    %c0_i32_0 = arith.constant 0 : i32
    %c0_i32_1 = arith.constant 0 : i32
    return %arg0, %c0_i32, %c0_i32_0 : i32, i32, i32
  }
}

</mosaic_0001>

<bundles_post_ra>
// kernel: tpu_custom_call.1
= control target key start
LH: loop header
LB: loop body
LE: loop exit
PB: predicated region body
PF: predicated region fallthrough
CT: control target
= control target key end

     0   :  { %12 = vsyncpa [#allocation3], 0  ;;  %s2820_s0 = inlined_call_operand.vmem [shape: f32[4,1,16,3], index: 0, kind: input, shape index: {}]   ;;  %s2821_s1 = inlined_call_operand.vmem [shape: f32[4,1,16,3], index: 1, kind: input, shape index: {}]   ;;  %s2822_s2 = inlined_call_operand.vmem [shape: f32[4,1,2,16], index: 2, kind: input, shape index: {}]   ;;  %s2823_s3 = inlined_call_operand.vmem [shape: f32[4,1,8,16], index: 3, kind: input, shape index: {}]   ;;  %s2824_s4 = inlined_call_operand.vmem [shape: f32[1,128], index: 4, kind: input, shape index: {}]   ;;  %s2825_s5 = inlined_call_operand.hbm [shape: f32[4,2,128], index: 5, kind: output, shape index: {0}]   ;;  %s2826_s6 = inlined_call_operand.hbm [shape: f32[4,8,384], index: 6, kind: output, shape index: {1}]  }
   0x1   :  { %14 = vsyncpa [#allocation3 + $0x1], 0 }
   0x2   :  { %15 = vsyncpa [#allocation5], 0 }
   0x3   :  { %17 = vsyncpa [#allocation5 + $0x1], 0  ;;  %s2553_s21 = smov 0   ;;  %s2555_s22 = smov 0  }
   0x4   :  { %s2557_s23 = smov 0   ;;  %s2559_s24 = smov 0  }
   0x5   :  { %s2561_s25 = smov 0   ;;  %s2563_s26 = smov 0  }
   0x6 LB: > { %s2103_s27 = sadd.s32 4294967295, %s2508_s26   ;;  %s2104_s28 = sadd.s32 4294967294, %s2508_s26   ;;  %s2508_s26 = sphi %s2563_s26, %s23_s26   ;;  %s2504_s25 = sphi %s2561_s25, %s2833_s25   ;;  %s2500_s24 = sphi %s2559_s24, %s2832_s24   ;;  %s2496_s23 = sphi %s2557_s23, %s2831_s23   ;;  %s2492_s22 = sphi %s2555_s22, %s2830_s22   ;;  %s2488_s21 = sphi %s2553_s21, %s2829_s21  }
   0x7   : > { %s35_s29 = sadd.s32 1, %s2504_s25  ;;  %s175_s30 = sadd.s32 1, %s2496_s23 }
   0x8   : > { %p37_p0 = scmp.ge.s32.totalorder %s35_s29, 4  ;;  %p185_p1 = scmp.ne.s32.totalorder %s2496_s23, %s2492_s22 }
   0x9   : > { %p186_p2 = scmp.eq.s32.totalorder %s2103_s27, 3  ;;  %p191_p3 = scmp.ne.s32.totalorder %s2492_s22, %s2488_s21 }
   0xa   : > { %s2835_s29 = smov (%p37_p0, %s35_s29), 0  ;;  %p192_p5 = scmp.eq.s32.totalorder %s2104_s28, 3 }
   0xb   : > { %p2593_p4 = por %p186_p2, %p185_p1  ;;  %s172_s8 = ssub.s32 %s2504_s25, %s2835_s29 }
   0xc   : > { %p2107_p6 = scmp.ge.s32.totalorder %s2508_s26, 1  ;;  %p173_p7 = scmp.eq.s32.totalorder %s172_s8, 0 }
   0xd   : > { %p2600_p8 = por %p192_p5, %p191_p3  ;;  %p283_p9 = scmp.lt.s32.totalorder %s2508_s26, 5 }
   0xe   : > { %s2606_s10 = scalar_select %p173_p7, %s2496_s23, %s175_s30  }
   0xf   : > { %p284_p10 = pnand %p2107_p6, %p283_p9 }
  0x10   : > { %p345_p11 = scmp.lt.s32.totalorder (!%p284_p10), %s2500_s24, 3  ;;  %vm394_vm0 = vcmask (!%p284_p10), 23552   ;;  %v2510_v10 = vmov (!%p284_p10), 1   ;;  %v2511_v11 = vmov (!%p284_p10), 0   ;;  %v2512_v12 = vmov (!%p284_p10), 0.0|0.0  }
  0x11   : > { %287 = sbr.rel (%p284_p10) target bundleno = 624 (0x270), region = 40  ;;  %2381 = vset.pattern.permute.xlu1 (!%p284_p10), %v2510_v10  ;;  %2382 = vset.pattern.permute.xlu0 (!%p284_p10), %v2511_v11  ;;  %vm2513_vm1 = vmmov (!%p284_p10), 0   ;;  %v2514_v13 = vmov (!%p284_p10), 0.0   ;;  %v2115_v16 = vld [vmem:[%s2824_s4] ss:$0 sm:$0xff] (!%p284_p10)  ;;  %vm437_vm2 = vcmask (!%p284_p10), 130048  }
  0x12   : > { %2243 = vmatprep.subr.bf16.mxu0 (!%p284_p10), %v2512_v12  ;;  %2246 = vmatprep.subr.bf16.mxu1 (!%p284_p10), %v2512_v12 }
  0x13   : > { %2163 = vmatprep.mubr.msk.f32.mxu0 (!%p284_p10), %vm2513_vm1, %v2514_v13  ;;  %2170 = vmatprep.mubr.msk.f32.mxu1 (!%p284_p10), %vm2513_vm1, %v2514_v13 }
  0x18   : > { %s2610_s11 = scalar_select %p345_p11, %s2500_s24, 3 }
  0x1a   : > { %s2121_s12 = sshll.u32 %s2610_s11, 4  ;;  %s2113_s27 = sshll.u32 %s2610_s11, 1 }
  0x1b   : > { %s353_s15 = scalar_lea.vmem %s2820_s0, %s2121_s12  ;;  %s362_s18 = scalar_lea.vmem %s2821_s1, %s2121_s12 }
  0x1c   : > { %v385_v0 = vld [vmem:[%s353_s15] sm:$0xff]  ;;  %v386_v2 = vld [vmem:[%s353_s15 + $0x8] sm:$0xff]  ;;  %s369_s8 = scalar_lea.vmem %s2822_s2, %s2113_s27  ;;  %s2672_s12 = sand.u32 1, %s2492_s22  }
  0x1d   : > { %v387_v1 = vld [vmem:[%s362_s18] sm:$0xff]  ;;  %v388_v4 = vld [vmem:[%s362_s18 + $0x8] sm:$0xff]  ;;  %s2108_s13 = sshll.u32 %s2672_s12, 1  ;;  %s2114_s14 = sshll.u32 %s2610_s11, 3 }
  0x1e   : > { %v2619_v3 = vsub.f32 %v385_v0, %v387_v1  ;;  %v2621_v5 = vsub.f32 %v386_v2, %v388_v4  ;;  %v436_v40 = vld [vmem:[%s369_s8] sm:$0x3]  ;;  %v2515_v1 = vmov 2   ;;  %s2676_s15 = scalar_lea.vmem [#allocation2], %s2108_s13  ;;  %s376_s18 = scalar_lea.vmem %s2823_s3, %s2114_s14 }
  0x1f   : > { %v439_v42 = vsel %vm437_vm2, %v436_v40, 0  ;;  %381 = vst [vmem:[%s2676_s15] sm:$0x3] %v2514_v13  ;;  %s2117_s11 = sshll.u32 %s2500_s24, 5  ;;  %s1930_s28 = sshll.u32 %s2676_s15, 4  ;;  %s1931_s28 = int_to_ptr.vmem [resolvable:$true] %s1930_s28 }
  0x20   : > { %v392_v6 = vmul.f32 %v2619_v3, %v2619_v3  ;;  %v393_v7 = vmul.f32 %v2621_v5, %v2621_v5  ;;  %v2642_v44 = vand.u32 4294901760, %v439_v42  ;;  %s2746_s27 = scalar_lea.hbm %s2825_s5, %s2117_s11  ;;  %s1912_s30 = scalar_lea.sflag [#allocation3], %s2672_s12 }
  0x21   : > { %s2398_s8 = scalar_lea.vmem %s1931_s28, 32  ;;  %s2516_s13 = smov [#allocation2]  }
  0x22   : > { %v395_v8 = vsel %vm394_vm0, %v392_v6, 0.0  ;;  %v398_v9 = vsel %vm394_vm0, %v393_v7, 0.0  ;;  %v509_v48 = vsub.f32 %v439_v42, %v2642_v44  ;;  %p2399_p12 = scmp.ne.s32.totalorder %s1931_s28, %s2398_s8  ;;  %s2402_s14 = sshll.u32 %s2516_s13, 4  ;;  %s2403_s14 = int_to_ptr.vmem [resolvable:$false] %s2402_s14 }
  0x23   : > { %396 = vadd.xlane.f32.xlu0 %v395_v8  ;;  %s2404_s16 = scalar_lea.vmem %s2403_s14, 64  ;;  %p2405_p1 = scmp.lt.s32.totalorder %s1931_s28, %s2403_s14 }
  0x24   : > { %v510_v57 = vand.u32 4294901760, %v509_v48  ;;  %p2400_p13 = pnand %p2399_p12, %p2593_p4  ;;  %p2406_p2 = scmp.lt.s32.totalorder %s2404_s16, %s2398_s8 }
  0x26   : > { %p2401_p0 = pneg %p2400_p13  ;;  %p2407_p3 = por %p2406_p2, %p2405_p1 }
  0x27   : > { %399 = vadd.xlane.f32.xlu0 %v398_v9 }
  0x28   : > { %p2408_p5 = pnand %p2407_p3, %p2401_p0 }
  0xb0   : > { %v397_v14 = vpop.xlane.xlu0 %396 }
  0xb1   : > { %2386 = vrsqrt.f32 %v397_v14 }
  0xb4   : > { %v400_v15 = vpop.xlane.xlu0 %399 }
  0xb5   : > { %2388 = vrsqrt.f32 %v400_v15 }
  0xbb   : > { %v2387_v17 = vpop.eup %2386 }
  0xbc   : > { %v405_v18 = vmul.f32 %v2387_v17, %v397_v14  ;;  %v419_v19 = vsub.f32 %v2115_v16, %v2387_v17  ;;  %v403_v24 = vmul.f32 %v2387_v17, %v2387_v17 }
  0xbe   : > { %v407_v20 = vmul.f32 -0.5, %v405_v18  ;;  %v421_v21 = vmul.f32 %v419_v19, %v419_v19  ;;  %v908_v22 = vmul.f32 25.0, %v419_v19  ;;  %v951_v19 = vld [vmem:[%s376_s18] sm:$0xff] }
  0xbf   : > { %v2389_v23 = vpop.eup %2388 }
  0xc0   : > { %v409_v25 = vmul.f32 1.442695, %v407_v20  ;;  %v406_v26 = vmul.f32 %v2389_v23, %v400_v15  ;;  %v420_v27 = vsub.f32 %v2115_v16, %v2389_v23  ;;  %v423_v28 = vsub.f32 0.0, %v421_v21 }
  0xc1   : > { %v910_v29 = vmul.f32 %v908_v22, %v403_v24  ;;  %v404_v34 = vmul.f32 %v2389_v23, %v2389_v23  ;;  %v953_v20 = vsel %vm437_vm2, %v951_v19, 0 }
  0xc2   : > { %2390 = vpow2.f32 %v409_v25  ;;  %v408_v30 = vmul.f32 -0.5, %v406_v26  ;;  %v422_v31 = vmul.f32 %v420_v27, %v420_v27  ;;  %v425_v32 = vmul.f32 12.5, %v423_v28 }
  0xc3   : > { %v909_v33 = vmul.f32 25.0, %v420_v27  ;;  %v912_v53 = vadd.f32 0.5, %v910_v29  ;;  %v2684_v21 = vand.u32 4294901760, %v953_v20 }
  0xc4   : > { %v411_v35 = vmul.f32 1.442695, %v408_v30  ;;  %v424_v36 = vsub.f32 0.0, %v422_v31  ;;  %v427_v37 = vmul.f32 1.442695, %v425_v32 }
  0xc5   : > { %v911_v38 = vmul.f32 %v909_v33, %v404_v34  ;;  %v2689_v26 = vsub.f32 %v953_v20, %v2684_v21 }
  0xc6   : > { %2392 = vpow2.f32 %v411_v35  ;;  %v426_v39 = vmul.f32 12.5, %v424_v36 }
  0xc7   : > { %2394 = vpow2.f32 %v427_v37  ;;  %v913_v61 = vadd.f32 0.5, %v911_v38  ;;  %v2693_v34 = vand.u32 4294901760, %v2689_v26 }
  0xc8   : > { %v429_v41 = vmul.f32 1.442695, %v426_v39 }
  0xca   : > { %2396 = vpow2.f32 %v429_v41  ;;  %v1027_v41 = vsub.f32 %v2689_v26, %v2693_v34 }
  0xcc   : > { %v2391_v43 = vpop.eup %2390 }
  0xcd   : > { %v902_v45 = vmul.f32 %v2391_v43, %v2387_v17 }
  0xcf   : > { %v904_v46 = vsub.f32 0.0, %v902_v45 }
  0xd0   : > { %v2393_v47 = vpop.eup %2392 }
  0xd1   : > { %v2395_v49 = vpop.eup %2394  ;;  %v906_v50 = vmul.f32 %v904_v46, %v2619_v3  ;;  %v903_v51 = vmul.f32 %v2393_v47, %v2389_v23  ;;  %v511_v3 = vsub.f32 %v509_v48, %v510_v57 }
  0xd2   : > { %v431_v52 = vmul.f32 0.030627461, %v2395_v49 }
  0xd3   : > { %918 = vperm.xlu0 %2382, %v906_v50   ;;  %929 = vperm.xlu1 %2381, %v906_v50   ;;  %v905_v54 = vsub.f32 0.0, %v903_v51  ;;  %v512_v9 = vand.u32 4294901760, %v511_v3 }
  0xd4   : > { %v2397_v55 = vpop.eup %2396  ;;  %v433_v56 = vmul.f32 %v2391_v43, %v431_v52  ;;  %v2646_v58 = vmul.f32 %v912_v53, %v431_v52  ;;  %v1028_v52 = vand.u32 4294901760, %v1027_v41 }
  0xd5   : > { %v907_v59 = vmul.f32 %v905_v54, %v2621_v5  ;;  %v432_v60 = vmul.f32 0.030627461, %v2397_v55 }
  0xd6   : > { %v442_v62 = vand.u32 4294901760, %v433_v56 }
  0xd7   : > { %933 = vperm.xlu1 %2381, %v907_v59   ;;  %v434_v63 = vmul.f32 %v2393_v47, %v432_v60  ;;  %v2649_v0 = vmul.f32 %v913_v61, %v432_v60  ;;  %2385 = vset.pattern.permute.xlu0 %v2515_v1 }
  0xd8   : > { %v520_v2 = vsub.f32 %v433_v56, %v442_v62 }
  0xd9   : > { %v445_v4 = vand.u32 4294901760, %v434_v63 }
  0xda   : > { %v521_v6 = vand.u32 4294901760, %v520_v2 }
  0xdb   : > { %2383 = vset.pattern.permute.xlu1 %v2511_v11  ;;  %v2244_v7 = vpack.c.bf16 %v445_v4, %v442_v62  ;;  %v527_v8 = vsub.f32 %v434_v63, %v445_v4 }
  0xdc   : > { %923 = vperm.xlu1 %2383, %v907_v59   ;;  %v522_v5 = vsub.f32 %v520_v2, %v521_v6 }
  0xdd   : > { %2245 = vmatpush3.bf16.msra.mxu0 %v2244_v7  ;;  %v528_v10 = vand.u32 4294901760, %v527_v8  ;;  %v2250_v14 = vpack.c.bf16 %v527_v8, %v520_v2 }
  0xde   : > { %2249 = vmatprep.subr.bf16.mxu0 %v2512_v12  ;;  %v523_v16 = vand.u32 4294901760, %v522_v5 }
  0xdf   : > { %v529_v15 = vsub.f32 %v527_v8, %v528_v10  ;;  %v2256_v18 = vpack.c.bf16 %v528_v10, %v521_v6 }
  0xe0   : > { %2384 = vset.pattern.permute.xlu1 %v2515_v1  ;;  %2164 = vmatmul.mubr.f32.vlgmr.msra.gmra.mrb[0].mxu0 %v512_v9 }
  0xe1   : > { %939 = vperm.xlu1 %2384, %v906_v50   ;;  %2251 = vmatpush3.bf16.msra.mxu0 %v2250_v14  ;;  %v530_v17 = vand.u32 4294901760, %v529_v15 }
  0xe2   : > { %2177 = vmatprep.mubr.msk.f32.mxu0 %vm2513_vm1, %v2514_v13  ;;  %2255 = vmatprep.subr.bf16.mxu0 %v2512_v12 }
  0xe3   : > { %v2247_v11 = vpack.c.bf16 %v530_v17, %v523_v16 }
  0xe4   : > { %2178 = vmatmul.mubr.f32.vlgmr.msra.gmra.mrb[2].mxu0 %v509_v48 }
  0xe5   : > { %943 = vperm.xlu1 %2384, %v907_v59   ;;  %2248 = vmatpush3.bf16.msra.mxu1 %v2247_v11 }
  0xe6   : > { %2257 = vmatpush3.bf16.msra.mxu0 %v2256_v18  ;;  %2252 = vmatprep.subr.bf16.mxu1 %v2512_v12 }
  0xe7   : > { %2191 = vmatprep.mubr.msk.f32.mxu0 %vm2513_vm1, %v2514_v13 }
  0xe8   : > { %2171 = vmatmul.mubr.f32.vlgmr.msra.gmra.mrb[0].mxu1 %v2642_v44 }
  0xe9   : > { %2254 = vmatpush3.bf16.msra.mxu1 %v2244_v7  ;;  %2184 = vmatprep.mubr.msk.f32.mxu1 %vm2513_vm1, %v2514_v13 }
  0xea   : > { %2258 = vmatprep.subr.bf16.mxu1 %v2512_v12  ;;  %2192 = vmatmul.mubr.f32.vlgmr.msra.gmra.mrb[4].mxu0 %v2642_v44 }
  0xeb   : > { %1023 = vmatprep.mubr.f32.mxu0 %v2514_v13 }
  0xec   : > { %2185 = vmatmul.mubr.f32.vlgmr.msra.gmra.mrb[2].mxu1 %v510_v57 }
  0xed   : > { %2260 = vmatpush3.bf16.msra.mxu1 %v2244_v7  ;;  %2198 = vmatprep.mubr.msk.f32.mxu1 %vm2513_vm1, %v2514_v13 }
  0xee   : > { %2285 = vmatprep.subr.bf16.mxu1 %v2512_v12 }
  0xf0   : > { %2199 = vmatmul.mubr.f32.vlgmr.msra.gmra.mrb[4].mxu1 %v2642_v44 }
  0xf1   : > { %2205 = vmatprep.mubr.msk.f32.mxu1 %vm2513_vm1, %v2514_v13 }
 0x152   : > { %v930_v22 = vpop.permute.xlu1 %929  ;;  %v919_v23 = vpop.permute.xlu0 %918 }
 0x153   : > { %v936_v24 = vmul.f32 %v930_v22, %v2646_v58  ;;  %v926_v25 = vmul.f32 %v919_v23, %v2646_v58 }
 0x155   : > { %v955_v27 = vand.u32 4294901760, %v936_v24  ;;  %v957_v28 = vand.u32 4294901760, %v926_v25 }
 0x156   : > { %v934_v29 = vpop.permute.xlu1 %933 }
 0x157   : > { %v1036_v30 = vsub.f32 %v936_v24, %v955_v27  ;;  %v937_v31 = vmul.f32 %v934_v29, %v2649_v0  ;;  %v1042_v35 = vsub.f32 %v926_v25, %v957_v28 }
 0x159   : > { %v1037_v32 = vand.u32 4294901760, %v1036_v30  ;;  %v959_v33 = vand.u32 4294901760, %v937_v31  ;;  %v1043_v44 = vand.u32 4294901760, %v1042_v35 }
 0x15b   : > { %v1048_v36 = vsub.f32 %v937_v31, %v959_v33  ;;  %v924_v37 = vpop.permute.xlu1 %923  ;;  %v2695_v38 = vpack.c.bf16 %v959_v33, %v955_v27  ;;  %v1038_v42 = vsub.f32 %v1036_v30, %v1037_v32  ;;  %v1044_v55 = vsub.f32 %v1042_v35, %v1043_v44 }
 0x15c   : > { %v927_v39 = vmul.f32 %v924_v37, %v2649_v0 }
 0x15d   : > { %v1049_v40 = vand.u32 4294901760, %v1048_v36  ;;  %2262 = vmatprep.subr.bf16.mxu0 %v2695_v38  ;;  %v2269_v43 = vpack.c.bf16 %v1048_v36, %v1036_v30  ;;  %v1039_v53 = vand.u32 4294901760, %v1038_v42  ;;  %v1045_v3 = vand.u32 4294901760, %v1044_v55 }
 0x15e   : > { %v961_v45 = vand.u32 4294901760, %v927_v39 }
 0x15f   : > { %v1050_v46 = vsub.f32 %v1048_v36, %v1049_v40  ;;  %v2277_v47 = vpack.c.bf16 %v1049_v40, %v1037_v32 }
 0x160   : > { %v2701_v48 = vpack.c.bf16 %v961_v45, %v957_v28  ;;  %v1054_v49 = vsub.f32 %v927_v39, %v961_v45  ;;  %v940_v50 = vpop.permute.xlu1 %939 }
 0x161   : > { %v946_v51 = vmul.f32 %v940_v50, %v2646_v58  ;;  %v1051_v54 = vand.u32 4294901760, %v1050_v46 }
 0x162   : > { %v1055_v56 = vand.u32 4294901760, %v1054_v49  ;;  %v2271_v57 = vpack.c.bf16 %v1054_v49, %v1042_v35  ;;  %2264 = vmatpush1.bf16.msra.mxu0 %v2701_v48 }
 0x163   : > { %v1447_v59 = vand.u32 4294901760, %v946_v51  ;;  %v2265_v60 = vpack.c.bf16 %v1051_v54, %v1039_v53 }
 0x164   : > { %v1056_v61 = vsub.f32 %v1054_v49, %v1055_v56  ;;  %v944_v62 = vpop.permute.xlu1 %943  ;;  %v2279_v63 = vpack.c.bf16 %v1055_v56, %v1043_v44 }
 0x165   : > { %v1525_v1 = vsub.f32 %v946_v51, %v1447_v59  ;;  %v947_v2 = vmul.f32 %v944_v62, %v2649_v0  ;;  %1029 = vmatmul.mubr.f32.vlgmr.msra.gmra.mrb[6].mxu0 %v1028_v52  ;;  %2266 = vmatprep.subr.bf16.mxu0 %v2265_v60 }
 0x166   : > { %v1057_v58 = vand.u32 4294901760, %v1056_v61  ;;  %1119 = vmatprep.mubr.f32.mxu0 %v2514_v13 }
 0x167   : > { %v1526_v4 = vand.u32 4294901760, %v1525_v1  ;;  %v1450_v6 = vand.u32 4294901760, %v947_v2 }
 0x168   : > { %v2267_v7 = vpack.c.bf16 %v1057_v58, %v1045_v3 }
 0x169   : > { %v2286_v8 = vpack.c.bf16 %v1450_v6, %v1447_v59  ;;  %v1532_v9 = vsub.f32 %v947_v2, %v1450_v6  ;;  %v1527_v5 = vsub.f32 %v1525_v1, %v1526_v4 }
 0x16a   : > { %2268 = vmatpush1.bf16.msra.mxu0 %v2267_v7 }
 0x16b   : > { %v1533_v10 = vand.u32 4294901760, %v1532_v9  ;;  %v2292_v14 = vpack.c.bf16 %v1532_v9, %v1525_v1  ;;  %2270 = vmatprep.subr.bf16.mxu0 %v2269_v43  ;;  %2287 = vmatpush3.bf16.msra.mxu1 %v2286_v8  ;;  %v1528_v16 = vand.u32 4294901760, %v1527_v5 }
 0x16c   : > { %2288 = vmatprep.subr.bf16.mxu1 %v2512_v12 }
 0x16d   : > { %v1534_v0 = vsub.f32 %v1532_v9, %v1533_v10  ;;  %1121 = vmatmul.mubr.f32.vlgmr.msra.gmra.mrb[6].mxu0 %v2684_v21  ;;  %v2298_v15 = vpack.c.bf16 %v1533_v10, %v1526_v4 }
 0x16e   : > { %2272 = vmatpush1.bf16.msra.mxu0 %v2271_v57  ;;  %2206 = vmatmul.mubr.f32.vlgmr.msra.gmra.mrb[6].mxu1 %v1028_v52 }
 0x16f   : > { %v1535_v17 = vand.u32 4294901760, %v1534_v0  ;;  %2274 = vmatprep.subr.bf16.mxu0 %v2695_v38  ;;  %1199 = vmatprep.mubr.f32.mxu0 %v2514_v13 }
 0x170   : > { %2212 = vmatprep.mubr.msk.f32.mxu1 %vm2513_vm1, %v2514_v13 }
 0x171   : > { %v2289_v11 = vpack.c.bf16 %v1535_v17, %v1528_v16 }
 0x173   : > { %2290 = vmatpush3.bf16.msra.mxu1 %v2289_v11 }
 0x174   : > { %2291 = vmatprep.subr.bf16.mxu1 %v2512_v12 }
 0x175   : > { %1202 = vmatmul.mubr.f32.vlgmr.msra.gmra.mrb[6].mxu0 %v2689_v26 }
 0x176   : > { %2276 = vmatpush1.bf16.msra.mxu0 %v2701_v48  ;;  %2213 = vmatmul.mubr.f32.vlgmr.msra.gmra.mrb[8].mxu1 %v2684_v21 }
 0x177   : > { %2278 = vmatprep.subr.bf16.mxu0 %v2277_v47  ;;  %2293 = vmatpush3.bf16.msra.mxu1 %v2292_v14 }
 0x178   : > { %2219 = vmatprep.mubr.msk.f32.mxu1 %vm2513_vm1, %v2514_v13  ;;  %2294 = vmatprep.subr.bf16.mxu1 %v2512_v12 }
 0x179   : > { %1276 = vmatprep.mubr.f32.mxu0 %v2514_v13 }
 0x17a   : > { %2220 = vmatmul.mubr.f32.vlgmr.msra.gmra.mrb[10].mxu1 %v2689_v26 }
 0x17b   : > { %2296 = vmatpush3.bf16.msra.mxu1 %v2286_v8  ;;  %2226 = vmatprep.mubr.msk.f32.mxu1 %vm2513_vm1, %v2514_v13 }
 0x17c   : > { %2297 = vmatprep.subr.bf16.mxu1 %v2512_v12 }
 0x17d   : > { %1280 = vmatmul.mubr.f32.vlgmr.msra.gmra.mrb[6].mxu0 %v2693_v34 }
 0x17e   : > { %2280 = vmatpush1.bf16.msra.mxu0 %v2279_v63  ;;  %2227 = vmatmul.mubr.f32.vlgmr.msra.gmra.mrb[12].mxu1 %v2693_v34 }
 0x17f   : > { %2282 = vmatprep.subr.bf16.mxu0 %v2695_v38  ;;  %2299 = vmatpush3.bf16.msra.mxu1 %v2298_v15 }
 0x180   : > { %2233 = vmatprep.mubr.msk.f32.mxu1 %vm2513_vm1, %v2514_v13  ;;  %2300 = vmatprep.subr.bf16.mxu1 %v2512_v12 }
 0x181   : > { %1362 = vmatprep.mubr.f32.mxu0 %v2514_v13 }
 0x182   : > { %2234 = vmatmul.mubr.f32.vlgmr.msra.gmra.mrb[14].mxu1 %v2684_v21 }
 0x183   : > { %2302 = vmatpush3.bf16.msra.mxu1 %v2286_v8  ;;  %2240 = vmatprep.mubr.msk.f32.mxu1 %vm2513_vm1, %v2514_v13 }
 0x185   : > { %1364 = vmatmul.mubr.f32.vlgmr.msra.gmra.mrb[6].mxu0 %v2684_v21 }
 0x186   : > { %2284 = vmatpush1.bf16.msra.mxu0 %v2701_v48  ;;  %2241 = vmatmul.mubr.f32.vlgmr.msra.gmra.mrb[16].mxu1 %v2684_v21 }
 0x187   : > { %1438 = vmatprep.mubr.f32.mxu0 %v2514_v13 }
 0x18d   : > { %1440 = vmatmul.mubr.f32.vlgmr.msra.gmra.mrb[6].mxu0 %v2684_v21  ;;  %v435_v21 = vld [vmem:[%s2676_s15] sm:$0x3] }
 0x1b3   : > { %v514_v12 = vpop.f32.mrb[0].mxu0 }
 0x1b4   : > { %v2165_v18 = vpop.f32.mrb[1].mxu0 }
 0x1b7   : > { %v671_v19 = vpop.f32.mrb[2].mxu0 }
 0x1b8   : > { %v2179_v20 = vpop.f32.mrb[3].mxu0 }
 0x1bb   : > { %v595_v22 = vpop.f32.mrb[0].mxu1 }
 0x1bc   : > { %v596_v23 = vadd.f32 %v595_v22, %v514_v12  ;;  %v2172_v24 = vpop.f32.mrb[1].mxu1 }
 0x1bd   : > { %v823_v25 = vpop.f32.mrb[4].mxu0 }
 0x1be   : > { %v672_v26 = vadd.f32 %v671_v19, %v596_v23  ;;  %v2193_v27 = vpop.f32.mrb[5].mxu0 }
 0x1bf   : > { %v746_v28 = vpop.f32.mrb[2].mxu1 }
 0x1c0   : > { %v747_v29 = vadd.f32 %v746_v28, %v672_v26  ;;  %v2186_v13 = vpop.f32.mrb[3].mxu1 }
 0x1c2   : > { %v824_v30 = vadd.f32 %v823_v25, %v747_v29 }
 0x1c3   : > { %v896_v31 = vpop.f32.mrb[4].mxu1 }
 0x1c4   : > { %v897_v32 = vadd.f32 %v896_v31, %v824_v30  ;;  %v2200_v33 = vpop.f32.mrb[5].mxu1 }
 0x1c6   : > { %v900_v34 = vadd.f32 %v897_v32, %v435_v21 }
 0x1c8   : > { %901 = vst [vmem:[%s2676_s15] sm:$0x3] %v900_v34 }
 0x1c9   : > { %2411 = shalt.err (!%p2408_p5)
}
 0x1ca   : > { %s2412_s15 = scalar_lea.hbm %s2746_s27, 32  ;;  %s2416_s11 = scalar_lea.hbm %s2825_s5, 128 }
 0x1cb   : > { %p2413_p6 = scmp.ne.s32.totalorder %s2746_s27, %s2412_s15  ;;  %p2417_p10 = scmp.lt.u32.totalorder %s2746_s27, %s2825_s5 }
 0x1cc   : > { %p2418_p11 = scmp.lt.u32.totalorder %s2416_s11, %s2412_s15  ;;  %p2420_p13 = scmp.lt.u32.totalorder %s2412_s15, %s2746_s27 }
 0x1cd   : > { %p2414_p7 = pnand %p2413_p6, %p2593_p4 }
 0x1ce   : > { %p2419_p12 = por %p2418_p11, %p2417_p10 }
 0x1cf   : > { %p2415_p9 = pneg %p2414_p7 }
 0x1d0   : > { %p2421_p0 = por %p2420_p13, %p2419_p12 }
 0x1d2   : > { %p2422_p1 = pnand %p2421_p0, %p2415_p9 }
 0x1d4   : > { %2425 = shalt.err (!%p2422_p1)
}
 0x1d5   : > { %2315 = dma.vmem_to_hbm [thread:$0]  (%p2593_p4), %s1931_s28, 32, %s2746_s27, %s1912_s30  }
 0x1d6   : > { %s2313_s8 = smul.u32 24, %s2672_s12  ;;  %s1917_s15 = scalar_lea.sflag [#allocation5], %s2672_s12 }
 0x1d7   : > { %s2314_s28 = smul.u32 384, %s2500_s24  ;;  %s2517_s24 = smov [#allocation4]  }
 0x1d8   : > { %s344_s27 = scalar_lea.vmem [#allocation4], %s2313_s8  ;;  %s2430_s18 = sshll.u32 %s2517_s24, 4  ;;  %s2431_s18 = int_to_ptr.vmem [resolvable:$false] %s2430_s18 }
 0x1d9   : > { %s1944_s30 = sshll.u32 %s344_s27, 4  ;;  %s2772_s16 = scalar_lea.hbm %s2826_s6, %s2314_s28  ;;  %s2774_s30 = int_to_ptr.vmem [resolvable:$true] %s1944_s30 }
 0x1da   : > { %s2426_s17 = scalar_lea.vmem %s2774_s30, 384  ;;  %s2432_s11 = scalar_lea.vmem %s2431_s18, 768 }
 0x1db   : > { %p2427_p2 = scmp.ne.s32.totalorder %s2774_s30, %s2426_s17  ;;  %p2433_p6 = scmp.lt.s32.totalorder %s2774_s30, %s2431_s18 }
 0x1dc   : > { %p2434_p7 = scmp.lt.s32.totalorder %s2432_s11, %s2426_s17 }
 0x1dd   : > { %p2428_p3 = pnand %p2427_p2, %p2593_p4 }
 0x1de   : > { %p2435_p9 = por %p2434_p7, %p2433_p6 }
 0x1df   : > { %p2429_p5 = pneg %p2428_p3 }
 0x1e1   : > { %p2436_p10 = pnand %p2435_p9, %p2429_p5 }
 0x241   : > { %v1519_v35 = vpop.f32.mrb[6].mxu1 }
 0x242   : > { %v2207_v36 = vpop.f32.mrb[7].mxu1 }
 0x249   : > { %v1600_v37 = vpop.f32.mrb[8].mxu1 }
 0x24a   : > { %v1601_v38 = vadd.f32 %v1600_v37, %v1519_v35  ;;  %v2214_v39 = vpop.f32.mrb[9].mxu1 }
 0x24d   : > { %v1676_v40 = vpop.f32.mrb[10].mxu1 }
 0x24e   : > { %v1677_v41 = vadd.f32 %v1676_v40, %v1601_v38  ;;  %v2221_v42 = vpop.f32.mrb[11].mxu1 }
 0x251   : > { %v1751_v43 = vpop.f32.mrb[12].mxu1 }
 0x252   : > { %v1752_v44 = vadd.f32 %v1751_v43, %v1677_v41  ;;  %v2228_v45 = vpop.f32.mrb[13].mxu1 }
 0x255   : > { %v1828_v46 = vpop.f32.mrb[14].mxu1 }
 0x256   : > { %v1829_v47 = vadd.f32 %v1828_v46, %v1752_v44  ;;  %v2235_v48 = vpop.f32.mrb[15].mxu1 }
 0x259   : > { %v1901_v49 = vpop.f32.mrb[16].mxu1 }
 0x25a   : > { %v1902_v50 = vadd.f32 %v1901_v49, %v1829_v47  ;;  %v2242_v51 = vpop.f32.mrb[17].mxu1 }
 0x25c   : > { %1910 = vst [vmem:[%s344_s27 + $0x10] sm:$0xff] %v1902_v50 }
 0x260   : > { %v1441_v52 = vpop.f32.mrb[6].mxu0 }
 0x261   : > { %v1443_v53 = vpop.f32.mrb[7].mxu0  ;;  %1908 = vst [vmem:[%s344_s27] sm:$0xff] %v1441_v52 }
 0x262   : > { %1909 = vst [vmem:[%s344_s27 + $0x8] sm:$0xff] %v1443_v53 }
 0x263   : > { %2439 = shalt.err (!%p2436_p10)
}
 0x264   : > { %s2440_s12 = scalar_lea.hbm %s2772_s16, 384  ;;  %s2444_s8 = scalar_lea.hbm %s2826_s6, 1536 }
 0x265   : > { %p2441_p11 = scmp.ne.s32.totalorder %s2772_s16, %s2440_s12  ;;  %p2445_p0 = scmp.lt.u32.totalorder %s2772_s16, %s2826_s6 }
 0x266   : > { %p2446_p1 = scmp.lt.u32.totalorder %s2444_s8, %s2440_s12  ;;  %p2448_p3 = scmp.lt.u32.totalorder %s2440_s12, %s2772_s16 }
 0x267   : > { %p2442_p12 = pnand %p2441_p11, %p2593_p4 }
 0x268   : > { %p2447_p2 = por %p2446_p1, %p2445_p0 }
 0x269   : > { %p2443_p13 = pneg %p2442_p12 }
 0x26a   : > { %p2449_p5 = por %p2448_p3, %p2447_p2 }
 0x26c   : > { %p2450_p6 = pnand %p2449_p5, %p2443_p13 }
 0x26e   : > { %2453 = shalt.err (!%p2450_p6)
}
 0x26f   : > { %2316 = dma.vmem_to_hbm [thread:$0]  (%p2593_p4), %s2774_s30, 384, %s2772_s16, %s1917_s15  }
 0x270 PF: > { %p2326_p7 = scmp.ge.s32.totalorder %s2508_s26, 2  ;;  %s1956_s13 = sand.u32 1, %s2488_s21  }
 0x271   : > { %s1957_s14 = scalar_lea.sflag [#allocation3], %s1956_s13 }
 0x272   : > { %p2320_p9 = pnand %p2326_p7, %p2600_p8 }
 0x274   : > { %2479 = dma.done.wait (!%p2320_p9), %s1957_s14, 32  }
 0x275   : > { %2481 = vsyncadd (!%p2320_p9), %s1957_s14, 4294967264  ;;  %s1966_s17 = scalar_lea.sflag [#allocation5], %s1956_s13 }
 0x276   : > { %2483 = dma.done.wait (!%p2320_p9), %s1966_s17, 384  }
 0x277   : > { %2485 = vsyncadd (!%p2320_p9), %s1966_s17, 4294966912  ;;  %s23_s26 = sadd.s32 1, %s2508_s26   ;;  %s2829_s21 = smov %s2492_s22 }
 0x278   : > { %p20_p10 = scmp.ge.s32.totalorder %s23_s26, 6   ;;  %s2830_s22 = smov %s2496_s23 }
 0x279   : > { %s2831_s23 = smov %s2606_s10  ;;  %s2832_s24 = smov %s2504_s25 }
 0x27a   : > { %s2833_s25 = smov %s2835_s29  ;;  %22 = sbr.rel (!%p20_p10) target bundleno = 6 (0x6), region = 105 }
 0x281   :  { %1971 = vsyncpa [#allocation3], 1 }
 0x282   :  { %1973 = vsyncpa [#allocation3 + $0x1], 1 }
 0x283   :  { %1974 = vsyncpa [#allocation5], 1 }
 0x284   :  { %1976 = vsyncpa [#allocation5 + $0x1], 1 }

</bundles_post_ra>
